<compile_context>
chip_gen: v7x
topology: tpu7x:2x2x1
jax: 0.10.0
libtpu: 0.0.40
codegen_flags: <defaults>
</compile_context>

<pallas_src>
import functools
import numpy as np

import jax
import jax.numpy as jnp
from jax.experimental import pallas as pl
from jax.experimental.pallas import tpu as pltpu

_LANE = 128


def next_power_of_2(n: int) -> int:
    if n and (not n & (n - 1)):
        return n
    count = 0
    while n != 0:
        n >>= 1
        count += 1
    return 1 << count


def _round_up(x: int, m: int) -> int:
    return ((x + m - 1) // m) * m


# ----------------------------------------------------------------------------
# Kernel body
# ----------------------------------------------------------------------------
def _make_decoder_kernel(num_dense_layers: int):
    """Kernel ref order:
        x, (W0, b0), ..., (W_{L-1}, b_{L-1}), (W_fc_tile, b_fc_tile), out, h_scratch
    """
    n_params = 2 * num_dense_layers + 2

    def kernel(*refs):
        x_ref = refs[0]
        param_refs = refs[1:1 + n_params]
        out_ref = refs[1 + n_params]
        h_ref = refs[2 + n_params]          # persistent VMEM scratch (TILE_B, node_p) bf16

        n = pl.program_id(1)

        # Hidden stack: compute once per batch tile, reuse across all fc-N tiles.
        @pl.when(n == 0)
        def _():
            h = x_ref[...]                               # already bf16
            for li in range(num_dense_layers):
                w_ref = param_refs[2 * li]
                b_ref = param_refs[2 * li + 1]
                y = jnp.dot(h, w_ref[...], preferred_element_type=jnp.float32)
                y = y + b_ref[...]                       # (1, out) bias, broadcasts
                y = jnp.where(y >= 0.0, y, 0.01 * y)     # leaky_relu, slope 0.01
                h = y.astype(jnp.bfloat16)
            h_ref[...] = h

        # Final fc tile + sigmoid.
        wf_ref = param_refs[-2]
        bf_ref = param_refs[-1]
        y = jnp.dot(h_ref[...], wf_ref[...], preferred_element_type=jnp.float32)
        y = y + bf_ref[...]
        # sigmoid(y) = 1 / (1 + exp(-y)); exp + approx reciprocal both hit the EUP.
        out_ref[...] = pl.reciprocal(1.0 + jnp.exp(-y), approx=True).astype(out_ref.dtype)

    return kernel


# ----------------------------------------------------------------------------
# Parameter init (mirrors the PyTorch module's layer shapes) + preparation
# ----------------------------------------------------------------------------
def init_dense_decoder_params(key, latent_shape, output_shape, node_count=1024):
    """Returns flat list [W0, b0, ..., W_fc, b_fc] with W as (in, out)
    (transposed relative to nn.Linear.weight), plus num_dense_layers."""
    flattened_size = int(np.prod(output_shape))

    dims = []
    input_count = latent_shape
    next_count = next_power_of_2(input_count)
    dims.append((input_count, next_count))
    input_count = next_count
    while input_count < node_count:
        dims.append((input_count, input_count * 2))
        input_count *= 2
    fc_dims = (node_count, flattened_size)

    params = []
    for (fan_in, fan_out) in dims + [fc_dims]:
        key, kw, kb = jax.random.split(key, 3)
        bound = 1.0 / np.sqrt(fan_in)   # matches nn.Linear default init range
        w = jax.random.uniform(kw, (fan_in, fan_out), jnp.float32, -bound, bound)
        b = jax.random.uniform(kb, (1, fan_out), jnp.float32, -bound, bound)
        params += [w, b]
    return params, len(dims)


def prepare_decoder_params(params, num_dense_layers):
    """Zero-pad every feature dim to a multiple of 128 (lane-dense) and cast
    weights to bf16 (biases stay f32). Returns flat list in kernel order."""
    prepped = []
    for li in range(num_dense_layers + 1):     # hidden layers + final fc
        w = params[2 * li]
        b = params[2 * li + 1]
        fi, fo = w.shape
        fi_p, fo_p = _round_up(fi, _LANE), _round_up(fo, _LANE)
        w_p = jnp.zeros((fi_p, fo_p), jnp.float32).at[:fi, :fo].set(w)
        b_p = jnp.zeros((1, fo_p), jnp.float32).at[:, :fo].set(b)
        prepped += [w_p.astype(jnp.bfloat16), b_p]
    return prepped


def _pick_tile_n(n_p: int) -> int:
    for cand in (2048, 1024, 512, 256, 128):
        if n_p % cand == 0:
            return cand
    return n_p  # unreachable: n_p is always a multiple of 128


# ----------------------------------------------------------------------------
# Forward
# ----------------------------------------------------------------------------
@functools.partial(jax.jit, static_argnames=("num_dense_layers", "output_shape"))
def dense_decoder_forward(x, prepped, num_dense_layers, output_shape):
    """x: (B, latent) f32. prepped: padded/bf16 params. Returns (B, *output_shape)."""
    batch, latent = x.shape
    flattened_size = int(np.prod(output_shape))

    # Padded (static) dims, derived from the prepared parameter shapes.
    latent_p = prepped[0].shape[0]
    node_p = prepped[-2].shape[0]
    n_p = prepped[-2].shape[1]

    # ---- tile geometry ----
    if batch >= 256:
        tile_b = 256                     # fills MXU M dim
        batch_p = _round_up(batch, tile_b)
    else:
        batch_p = _round_up(batch, 16)   # bf16 sublane-pack aligned single tile
        tile_b = batch_p

    tile_n = _pick_tile_n(n_p)
    grid = (batch_p // tile_b, n_p // tile_n)

    # ---- pad the activation input (zero rows/cols are exact through the net) ----
    x_p = jnp.zeros((batch_p, latent_p), jnp.float32).at[:batch, :latent].set(x)
    x_p = x_p.astype(jnp.bfloat16)

    # ---- BlockSpecs ----
    in_specs = [pl.BlockSpec((tile_b, latent_p), lambda b, n: (b, 0))]
    for li in range(num_dense_layers):
        w = prepped[2 * li]
        bia = prepped[2 * li + 1]
        # Hidden weights/biases: block index constant -> stays VMEM-resident.
        in_specs.append(pl.BlockSpec(w.shape, lambda b, n: (0, 0)))
        in_specs.append(pl.BlockSpec(bia.shape, lambda b, n: (0, 0)))
    # fc weight/bias streamed per N tile.
    in_specs.append(pl.BlockSpec((node_p, tile_n), lambda b, n: (0, n)))
    in_specs.append(pl.BlockSpec((1, tile_n), lambda b, n: (0, n)))
    out_spec = pl.BlockSpec((tile_b, tile_n), lambda b, n: (b, n))

    # ---- VMEM budget: ~80% of physical capacity (re-derived per generation) ----
    try:
        info = pltpu.get_tpu_info()
        vmem_cap = int(getattr(info, "vmem_capacity_bytes", 64 << 20))
    except Exception:
        vmem_cap = 64 << 20
    vmem_limit = int(min(vmem_cap * 0.8, 100 << 20))
    vmem_limit = max(vmem_limit, 32 << 20)

    # ---- advisory cost estimate ----
    flops = 0
    bytes_accessed = x_p.size * 2 + batch_p * n_p * 4
    for li in range(num_dense_layers):
        w = prepped[2 * li]
        flops += 2 * batch_p * w.shape[0] * w.shape[1]
        bytes_accessed += w.size * 2 + prepped[2 * li + 1].size * 4
    flops += 2 * batch_p * node_p * n_p
    bytes_accessed += prepped[-2].size * 2 + prepped[-1].size * 4
    cost = pl.CostEstimate(flops=int(flops),
                           transcendentals=int(batch_p * n_p),
                           bytes_accessed=int(bytes_accessed))

    out_flat = pl.pallas_call(
        _make_decoder_kernel(num_dense_layers),
        out_shape=jax.ShapeDtypeStruct((batch_p, n_p), jnp.float32),
        grid_spec=pltpu.PrefetchScalarGridSpec(
            num_scalar_prefetch=0,
            grid=grid,
            in_specs=in_specs,
            out_specs=out_spec,
            scratch_shapes=[pltpu.VMEM((tile_b, node_p), jnp.bfloat16)],
        ),
        compiler_params=pltpu.CompilerParams(
            dimension_semantics=("parallel", "arbitrary"),
            vmem_limit_bytes=vmem_limit,
        ),
        cost_estimate=cost,
    )(x_p, *prepped)

    out = out_flat[:batch, :flattened_size]
    return out.reshape((-1,) + tuple(output_shape))


# ----------------------------------------------------------------------------
# Pure-JAX reference (same numeric path: padded params, bf16 matmuls, f32 acc)
# ----------------------------------------------------------------------------
def _reference_forward(x, prepped, num_dense_layers, output_shape):
    flattened_size = int(np.prod(output_shape))
    latent_p = prepped[0].shape[0]
    h = jnp.zeros((x.shape[0], latent_p), jnp.float32).at[:, :x.shape[1]].set(x)
    h = h.astype(jnp.bfloat16)
    for li in range(num_dense_layers):
        w, b = prepped[2 * li], prepped[2 * li + 1]
        y = jnp.dot(h, w, preferred_element_type=jnp.float32) + b
        y = jnp.where(y >= 0.0, y, 0.01 * y)
        h = y.astype(jnp.bfloat16)
    wf, bf = prepped[-2], prepped[-1]
    y = jnp.dot(h, wf, preferred_element_type=jnp.float32) + bf
    y = jax.nn.sigmoid(y)
    return y[:, :flattened_size].reshape((-1,) + tuple(output_shape))


if __name__ == "__main__":
    # Small, forward-consistent shapes:
    #   latent=24 -> nextPowerOf2=32 -> dense widths 24->32->64->128 (node_count=128)
    #   output_shape=(4, 8, 8) -> flattened_size=256, fc: 128->256
    latent_shape = 24
    node_count = 128
    output_shape = (4, 8, 8)
    batch = 2

    key = jax.random.PRNGKey(0)
    key, kx = jax.random.split(key)
    x = jax.random.normal(kx, (batch, latent_shape), jnp.float32)

    raw_params, num_dense_layers = init_dense_decoder_params(
        key, latent_shape, output_shape, node_count=node_count
    )
    prepped = prepare_decoder_params(raw_params, num_dense_layers)

    out = dense_decoder_forward(x, prepped, num_dense_layers, output_shape)
    out = jax.block_until_ready(out)

    ref = _reference_forward(x, prepped, num_dense_layers, output_shape)
    np.testing.assert_allclose(np.asarray(out), np.asarray(ref),
                               rtol=1e-2, atol=1e-2)
    assert out.shape == (batch,) + output_shape
    assert out.dtype == jnp.float32

    print("KERNEL_OK")
</pallas_src>

<mosaic_0001>
module attributes {stable_mosaic.version = 11 : i64} {
  func.func @kernel(%arg0: i32, %arg1: i32, %arg2: memref<16x128xbf16, #tpu.memory_space<vmem>>, %arg3: memref<128x128xbf16, #tpu.memory_space<vmem>>, %arg4: memref<1x128xf32, #tpu.memory_space<vmem>>, %arg5: memref<128x128xbf16, #tpu.memory_space<vmem>>, %arg6: memref<1x128xf32, #tpu.memory_space<vmem>>, %arg7: memref<128x128xbf16, #tpu.memory_space<vmem>>, %arg8: memref<1x128xf32, #tpu.memory_space<vmem>>, %arg9: memref<128x256xbf16, #tpu.memory_space<vmem>>, %arg10: memref<1x256xf32, #tpu.memory_space<vmem>>, %arg11: memref<16x256xf32, #tpu.memory_space<vmem>>, %arg12: memref<16x128xbf16, #tpu.memory_space<vmem>>) attributes {dimension_semantics = [#tpu.dimension_semantics<parallel>, #tpu.dimension_semantics<arbitrary>], iteration_bounds = array<i64: 1, 1>, scalar_prefetch = 0 : i64, scratch_operands = 1 : i64, tpu.core_type = #tpu.core_type<tc>, window_params = [{transform_indices = @transform_0, window_bounds = array<i64: 16, 128>}, {pipeline_mode = #tpu.pipeline_mode<synchronous>, transform_indices = @transform_1, window_bounds = array<i64: 128, 128>}, {pipeline_mode = #tpu.pipeline_mode<synchronous>, transform_indices = @transform_2, window_bounds = array<i64: 1, 128>}, {pipeline_mode = #tpu.pipeline_mode<synchronous>, transform_indices = @transform_3, window_bounds = array<i64: 128, 128>}, {pipeline_mode = #tpu.pipeline_mode<synchronous>, transform_indices = @transform_4, window_bounds = array<i64: 1, 128>}, {pipeline_mode = #tpu.pipeline_mode<synchronous>, transform_indices = @transform_5, window_bounds = array<i64: 128, 128>}, {pipeline_mode = #tpu.pipeline_mode<synchronous>, transform_indices = @transform_6, window_bounds = array<i64: 1, 128>}, {transform_indices = @transform_7, window_bounds = array<i64: 128, 256>}, {transform_indices = @transform_8, window_bounds = array<i64: 1, 256>}, {transform_indices = @transform_9, window_bounds = array<i64: 16, 256>}]} {
    %c0_i32 = arith.constant 0 : i32
    %0 = arith.cmpi eq, %arg1, %c0_i32 : i32
    %1 = arith.extui %0 : i1 to i32
    %c0_i32_0 = arith.constant 0 : i32
    %2 = arith.cmpi ne, %1, %c0_i32_0 : i32
    scf.if %2 {
      %c0_10 = arith.constant 0 : index
      %c0_11 = arith.constant 0 : index
      %16 = vector.load %arg2[%c0_10, %c0_11] : memref<16x128xbf16, #tpu.memory_space<vmem>>, vector<16x128xbf16>
      %c0_12 = arith.constant 0 : index
      %c0_13 = arith.constant 0 : index
      %17 = vector.load %arg3[%c0_12, %c0_13] : memref<128x128xbf16, #tpu.memory_space<vmem>>, vector<128x128xbf16>
      %cst_14 = arith.constant dense<0.000000e+00> : vector<16x128xf32>
      %18 = tpu.matmul %16, %17, %cst_14 {dimension_numbers = #tpu.dot_dimension_numbers<[1], [0], [0], [1], [0, 0, 1, 1], [], []>} : vector<16x128xbf16>, vector<128x128xbf16>, vector<16x128xf32> -> vector<16x128xf32>
      %c0_15 = arith.constant 0 : index
      %c0_16 = arith.constant 0 : index
      %19 = vector.load %arg4[%c0_15, %c0_16] : memref<1x128xf32, #tpu.memory_space<vmem>>, vector<1x128xf32>
      %20 = vector.broadcast %19 : vector<1x128xf32> to vector<16x128xf32>
      %21 = arith.addf %18, %20 : vector<16x128xf32>
      %cst_17 = arith.constant 0.000000e+00 : f32
      %22 = vector.broadcast %cst_17 : f32 to vector<16x128xf32>
      %23 = arith.cmpf oge, %21, %22 : vector<16x128xf32>
      %cst_18 = arith.constant 0.00999999977 : f32
      %24 = vector.broadcast %cst_18 : f32 to vector<16x128xf32>
      %25 = arith.mulf %24, %21 : vector<16x128xf32>
      %26 = arith.select %23, %21, %25 : vector<16x128xi1>, vector<16x128xf32>
      %27 = arith.truncf %26 : vector<16x128xf32> to vector<16x128xbf16>
      %c0_19 = arith.constant 0 : index
      %c0_20 = arith.constant 0 : index
      %28 = vector.load %arg5[%c0_19, %c0_20] : memref<128x128xbf16, #tpu.memory_space<vmem>>, vector<128x128xbf16>
      %cst_21 = arith.constant dense<0.000000e+00> : vector<16x128xf32>
      %29 = tpu.matmul %27, %28, %cst_21 {dimension_numbers = #tpu.dot_dimension_numbers<[1], [0], [0], [1], [0, 0, 1, 1], [], []>} : vector<16x128xbf16>, vector<128x128xbf16>, vector<16x128xf32> -> vector<16x128xf32>
      %c0_22 = arith.constant 0 : index
      %c0_23 = arith.constant 0 : index
      %30 = vector.load %arg6[%c0_22, %c0_23] : memref<1x128xf32, #tpu.memory_space<vmem>>, vector<1x128xf32>
      %31 = vector.broadcast %30 : vector<1x128xf32> to vector<16x128xf32>
      %32 = arith.addf %29, %31 : vector<16x128xf32>
      %cst_24 = arith.constant 0.000000e+00 : f32
      %33 = vector.broadcast %cst_24 : f32 to vector<16x128xf32>
      %34 = arith.cmpf oge, %32, %33 : vector<16x128xf32>
      %cst_25 = arith.constant 0.00999999977 : f32
      %35 = vector.broadcast %cst_25 : f32 to vector<16x128xf32>
      %36 = arith.mulf %35, %32 : vector<16x128xf32>
      %37 = arith.select %34, %32, %36 : vector<16x128xi1>, vector<16x128xf32>
      %38 = arith.truncf %37 : vector<16x128xf32> to vector<16x128xbf16>
      %c0_26 = arith.constant 0 : index
      %c0_27 = arith.constant 0 : index
      %39 = vector.load %arg7[%c0_26, %c0_27] : memref<128x128xbf16, #tpu.memory_space<vmem>>, vector<128x128xbf16>
      %cst_28 = arith.constant dense<0.000000e+00> : vector<16x128xf32>
      %40 = tpu.matmul %38, %39, %cst_28 {dimension_numbers = #tpu.dot_dimension_numbers<[1], [0], [0], [1], [0, 0, 1, 1], [], []>} : vector<16x128xbf16>, vector<128x128xbf16>, vector<16x128xf32> -> vector<16x128xf32>
      %c0_29 = arith.constant 0 : index
      %c0_30 = arith.constant 0 : index
      %41 = vector.load %arg8[%c0_29, %c0_30] : memref<1x128xf32, #tpu.memory_space<vmem>>, vector<1x128xf32>
      %42 = vector.broadcast %41 : vector<1x128xf32> to vector<16x128xf32>
      %43 = arith.addf %40, %42 : vector<16x128xf32>
      %cst_31 = arith.constant 0.000000e+00 : f32
      %44 = vector.broadcast %cst_31 : f32 to vector<16x128xf32>
      %45 = arith.cmpf oge, %43, %44 : vector<16x128xf32>
      %cst_32 = arith.constant 0.00999999977 : f32
      %46 = vector.broadcast %cst_32 : f32 to vector<16x128xf32>
      %47 = arith.mulf %46, %43 : vector<16x128xf32>
      %48 = arith.select %45, %43, %47 : vector<16x128xi1>, vector<16x128xf32>
      %49 = arith.truncf %48 : vector<16x128xf32> to vector<16x128xbf16>
      %c0_33 = arith.constant 0 : index
      %c0_34 = arith.constant 0 : index
      %50 = vector.load %arg12[%c0_33, %c0_34] : memref<16x128xbf16, #tpu.memory_space<vmem>>, vector<16x128xbf16>
      tpu.vector_store %arg12[%c0_33, %c0_34], %49 {strides = array<i32>} : memref<16x128xbf16, #tpu.memory_space<vmem>>, vector<16x128xbf16>,
    } else {
    }
    %c0 = arith.constant 0 : index
    %c0_1 = arith.constant 0 : index
    %3 = vector.load %arg12[%c0, %c0_1] : memref<16x128xbf16, #tpu.memory_space<vmem>>, vector<16x128xbf16>
    %c0_2 = arith.constant 0 : index
    %c0_3 = arith.constant 0 : index
    %4 = vector.load %arg9[%c0_2, %c0_3] : memref<128x256xbf16, #tpu.memory_space<vmem>>, vector<128x256xbf16>
    %cst = arith.constant dense<0.000000e+00> : vector<16x256xf32>
    %5 = tpu.matmul %3, %4, %cst {dimension_numbers = #tpu.dot_dimension_numbers<[1], [0], [0], [1], [0, 0, 1, 1], [], []>} : vector<16x128xbf16>, vector<128x256xbf16>, vector<16x256xf32> -> vector<16x256xf32>
    %c0_4 = arith.constant 0 : index
    %c0_5 = arith.constant 0 : index
    %6 = vector.load %arg10[%c0_4, %c0_5] : memref<1x256xf32, #tpu.memory_space<vmem>>, vector<1x256xf32>
    %7 = vector.broadcast %6 : vector<1x256xf32> to vector<16x256xf32>
    %8 = arith.addf %5, %7 : vector<16x256xf32>
    %cst_6 = arith.constant 0.000000e+00 : f32
    %9 = vector.broadcast %cst_6 : f32 to vector<16x256xf32>
    %10 = arith.subf %9, %8 : vector<16x256xf32>
    %11 = math.exp %10 : vector<16x256xf32>
    %cst_7 = arith.constant 1.000000e+00 : f32
    %12 = vector.broadcast %cst_7 : f32 to vector<16x256xf32>
    %13 = arith.addf %12, %11 : vector<16x256xf32>
    %14 = tpu.reciprocal %13 {approx = true} : vector<16x256xf32> -> vector<16x256xf32>
    %c0_8 = arith.constant 0 : index
    %c0_9 = arith.constant 0 : index
    %15 = vector.load %arg11[%c0_8, %c0_9] : memref<16x256xf32, #tpu.memory_space<vmem>>, vector<16x256xf32>
    tpu.vector_store %arg11[%c0_8, %c0_9], %14 {strides = array<i32>} : memref<16x256xf32, #tpu.memory_space<vmem>>, vector<16x256xf32>,
    return
  }
  func.func @transform_0(%arg0: i32, %arg1: i32) -> (i32, i32) {
    %c0_i32 = arith.constant 0 : i32
    %c0_i32_0 = arith.constant 0 : i32
    return %arg0, %c0_i32 : i32, i32
  }
  func.func @transform_1(%arg0: i32, %arg1: i32) -> (i32, i32) {
    %c0_i32 = arith.constant 0 : i32
    %c0_i32_0 = arith.constant 0 : i32
    %c0_i32_1 = arith.constant 0 : i32
    return %c0_i32, %c0_i32_0 : i32, i32
  }
  func.func @transform_2(%arg0: i32, %arg1: i32) -> (i32, i32) {
    %c0_i32 = arith.constant 0 : i32
    %c0_i32_0 = arith.constant 0 : i32
    %c0_i32_1 = arith.constant 0 : i32
    return %c0_i32, %c0_i32_0 : i32, i32
  }
  func.func @transform_3(%arg0: i32, %arg1: i32) -> (i32, i32) {
    %c0_i32 = arith.constant 0 : i32
    %c0_i32_0 = arith.constant 0 : i32
    %c0_i32_1 = arith.constant 0 : i32
    return %c0_i32, %c0_i32_0 : i32, i32
  }
  func.func @transform_4(%arg0: i32, %arg1: i32) -> (i32, i32) {
    %c0_i32 = arith.constant 0 : i32
    %c0_i32_0 = arith.constant 0 : i32
    %c0_i32_1 = arith.constant 0 : i32
    return %c0_i32, %c0_i32_0 : i32, i32
  }
  func.func @transform_5(%arg0: i32, %arg1: i32) -> (i32, i32) {
    %c0_i32 = arith.constant 0 : i32
    %c0_i32_0 = arith.constant 0 : i32
    %c0_i32_1 = arith.constant 0 : i32
    return %c0_i32, %c0_i32_0 : i32, i32
  }
  func.func @transform_6(%arg0: i32, %arg1: i32) -> (i32, i32) {
    %c0_i32 = arith.constant 0 : i32
    %c0_i32_0 = arith.constant 0 : i32
    %c0_i32_1 = arith.constant 0 : i32
    return %c0_i32, %c0_i32_0 : i32, i32
  }
  func.func @transform_7(%arg0: i32, %arg1: i32) -> (i32, i32) {
    %c0_i32 = arith.constant 0 : i32
    %c0_i32_0 = arith.constant 0 : i32
    return %c0_i32, %arg1 : i32, i32
  }
  func.func @transform_8(%arg0: i32, %arg1: i32) -> (i32, i32) {
    %c0_i32 = arith.constant 0 : i32
    %c0_i32_0 = arith.constant 0 : i32
    return %c0_i32, %arg1 : i32, i32
  }
  func.func @transform_9(%arg0: i32, %arg1: i32) -> (i32, i32) {
    %c0_i32 = arith.constant 0 : i32
    return %arg0, %arg1 : i32, i32
  }
}

</mosaic_0001>

<bundles_post_ra>
// kernel: dense_decoder_forward.1
= control target key start
LH: loop header
LB: loop body
LE: loop exit
PB: predicated region body
PF: predicated region fallthrough
CT: control target
= control target key end

     0   :  { %14 = vsyncpa [#allocation4], 0  ;;  %s1131_s0 = inlined_call_operand.vmem [shape: bf16[16,128], index: 0, kind: input, shape index: {}]   ;;  %s1132_s1 = inlined_call_operand.hbm [shape: bf16[128,128], index: 1, kind: input, shape index: {}]   ;;  %s1133_s2 = inlined_call_operand.vmem [shape: f32[1,128], index: 2, kind: input, shape index: {}]   ;;  %s1134_s3 = inlined_call_operand.hbm [shape: bf16[128,128], index: 3, kind: input, shape index: {}]   ;;  %s1135_s4 = inlined_call_operand.vmem [shape: f32[1,128], index: 4, kind: input, shape index: {}]   ;;  %s1136_s5 = inlined_call_operand.hbm [shape: bf16[128,128], index: 5, kind: input, shape index: {}]   ;;  %s1137_s6 = inlined_call_operand.vmem [shape: f32[1,128], index: 6, kind: input, shape index: {}]   ;;  %s1138_s7 = inlined_call_operand.hbm [shape: bf16[128,256], index: 7, kind: input, shape index: {}]   ;;  %s1139_s8 = inlined_call_operand.vmem [shape: f32[1,256], index: 8, kind: input, shape index: {}]   ;;  %s1140_s9 = inlined_call_operand.vmem [shape: f32[16,256], index: 9, kind: output, shape index: {}]  }
   0x1   :  { %15 = vsyncpa [#allocation6], 0 }
   0x2   :  { %16 = vsyncpa [#allocation9], 0  ;;  %s942_s30 = smov [#allocation5]   ;;  %s943_s11 = smov [#allocation3]  }
   0x3   :  { %s38_s10 = sshll.u32 %s942_s30, 4  ;;  %s24_s12 = sshll.u32 %s943_s11, 4  ;;  %s39_s10 = int_to_ptr.vmem [resolvable:$true] %s38_s10  ;;  %s1003_s12 = int_to_ptr.vmem [resolvable:$true] %s24_s12 }
   0x4   :  { %s848_s15 = scalar_lea.hbm %s1134_s3, 1024 }
   0x5   :  { %p849_p0 = scmp.ne.s32.totalorder %s1134_s3, %s848_s15  ;;  %p852_p1 = scmp.lt.u32.totalorder %s848_s15, %s1134_s3 }
   0x7   :  { %p854_p2 = pnand %p852_p1, %p849_p0 }
   0x9   :  { %857 = shalt.err (!%p854_p2)
}
   0xa   :  { %s858_s20 = scalar_lea.vmem %s39_s10, 1024  ;;  %p863_p4 = scmp.lt.s32.totalorder %s39_s10, %s39_s10 }
   0xb   :  { %p859_p3 = scmp.ne.s32.totalorder %s39_s10, %s858_s20  ;;  %p864_p5 = scmp.lt.s32.totalorder %s858_s20, %s858_s20 }
   0xd   :  { %p865_p6 = por %p864_p5, %p863_p4 }
   0xf   :  { %p866_p7 = pnand %p865_p6, %p859_p3 }
  0x11   :  { %869 = shalt.err (!%p866_p7)
}
  0x12   :  { %s944_s21 = smov 64   ;;  %s945_s22 = smov 4  }
  0x13   :  { %44 = dma.hbm_to_vmem [thread:$0]  %s1134_s3, 1024, %s39_s10, [#allocation6], %s944_s21, %s944_s21, %s945_s22  }
  0x14   :  { %s870_s27 = scalar_lea.hbm %s1132_s1, 1024 }
  0x15   :  { %p871_p8 = scmp.ne.s32.totalorder %s1132_s1, %s870_s27  ;;  %p874_p9 = scmp.lt.u32.totalorder %s870_s27, %s1132_s1 }
  0x17   :  { %p876_p10 = pnand %p874_p9, %p871_p8 }
  0x19   :  { %879 = shalt.err (!%p876_p10)
}
  0x1a   :  { %s880_s13 = scalar_lea.vmem %s1003_s12, 1024  ;;  %p885_p12 = scmp.lt.s32.totalorder %s1003_s12, %s1003_s12 }
  0x1b   :  { %p881_p11 = scmp.ne.s32.totalorder %s1003_s12, %s880_s13  ;;  %p886_p13 = scmp.lt.s32.totalorder %s880_s13, %s880_s13 }
  0x1d   :  { %p887_p0 = por %p886_p13, %p885_p12 }
  0x1f   :  { %p888_p1 = pnand %p887_p0, %p881_p11 }
  0x21   :  { %891 = shalt.err (!%p888_p1)
}
  0x22   :  { %30 = dma.hbm_to_vmem [thread:$0]  %s1132_s1, 1024, %s1003_s12, [#allocation4], %s944_s21, %s944_s21, %s945_s22  }
  0x23   :  { %s946_s14 = smov [#allocation7]   ;;  %s947_s16 = smov [#allocation8]  }
  0x24   :  { %s52_s15 = sshll.u32 %s946_s14, 4  ;;  %s66_s17 = sshll.u32 %s947_s16, 4  ;;  %s53_s15 = int_to_ptr.vmem [resolvable:$true] %s52_s15  ;;  %s1040_s17 = int_to_ptr.vmem [resolvable:$true] %s66_s17 }
  0x25   :  { %s892_s20 = scalar_lea.hbm %s1136_s5, 1024 }
  0x26   :  { %p893_p2 = scmp.ne.s32.totalorder %s1136_s5, %s892_s20  ;;  %p896_p3 = scmp.lt.u32.totalorder %s892_s20, %s1136_s5 }
  0x28   :  { %p898_p4 = pnand %p896_p3, %p893_p2 }
  0x2a   :  { %901 = shalt.err (!%p898_p4)
}
  0x2b   :  { %s902_s1 = scalar_lea.vmem %s53_s15, 1024  ;;  %p907_p6 = scmp.lt.s32.totalorder %s53_s15, %s53_s15 }
  0x2c   :  { %p903_p5 = scmp.ne.s32.totalorder %s53_s15, %s902_s1  ;;  %p908_p7 = scmp.lt.s32.totalorder %s902_s1, %s902_s1 }
  0x2e   :  { %p909_p8 = por %p908_p7, %p907_p6 }
  0x30   :  { %p910_p9 = pnand %p909_p8, %p903_p5 }
  0x32   :  { %913 = shalt.err (!%p910_p9)
}
  0x33   :  { %58 = dma.hbm_to_vmem [thread:$0]  %s1136_s5, 1024, %s53_s15, [#allocation6], %s944_s21, %s944_s21, %s945_s22  }
  0x34   :  { %s914_s30 = scalar_lea.hbm %s1138_s7, 2048 }
  0x35   :  { %p915_p10 = scmp.ne.s32.totalorder %s1138_s7, %s914_s30  ;;  %p918_p11 = scmp.lt.u32.totalorder %s914_s30, %s1138_s7 }
  0x37   :  { %p920_p12 = pnand %p918_p11, %p915_p10 }
  0x39   :  { %923 = shalt.err (!%p920_p12)
}
  0x3a   :  { %s924_s14 = scalar_lea.vmem %s1040_s17, 2048  ;;  %p929_p0 = scmp.lt.s32.totalorder %s1040_s17, %s1040_s17 }
  0x3b   :  { %p925_p13 = scmp.ne.s32.totalorder %s1040_s17, %s924_s14  ;;  %p930_p1 = scmp.lt.s32.totalorder %s924_s14, %s924_s14 }
  0x3d   :  { %p931_p2 = por %p930_p1, %p929_p0 }
  0x3f   :  { %p932_p3 = pnand %p931_p2, %p925_p13 }
  0x41   :  { %935 = shalt.err (!%p932_p3)
}
  0x42   :  { %s948_s5 = smov 128   ;;  %s949_s21 = smov 8  }
  0x43   :  { %72 = dma.hbm_to_vmem [thread:$0]  %s1138_s7, 2048, %s1040_s17, [#allocation9], %s948_s5, %s948_s5, %s949_s21  }
  0x44   :  { %936 = dma.done.wait [#allocation4], 1024  }
  0x45   :  { %937 = vsyncadd [#allocation4], 4294966272 }
  0x46   :  { %938 = dma.done.wait [#allocation6], 2048  }
  0x47   :  { %939 = vsyncadd [#allocation6], 4294965248 }
  0x48   :  { %940 = dma.done.wait [#allocation9], 2048  }
  0x49   :  { %941 = vsyncadd [#allocation9], 4294965248  ;;  %v950_v0 = vmov 0.0   ;;  %vm951_vm0 = vmmov 0   ;;  %v783_v1 = vld [vmem:[#allocation3] sm:$0xff]   ;;  %v784_v2 = vld [vmem:[#allocation3 + $0x8] sm:$0xff]  }
  0x4a   :  { %712 = vmatprep.subr.bf16.mxu0 %v950_v0  ;;  %728 = vmatprep.mubr.msk.bf16.mxu0 %vm951_vm0, %v950_v0  ;;  %v785_v3 = vld [vmem:[#allocation3 + $0x10] sm:$0xff]   ;;  %v792_v4 = vld [vmem:[#allocation5] sm:$0xff]   ;;  %v786_v5 = vld [vmem:[#allocation3 + $0x18] sm:$0xff]  }
  0x4b   :  { %732 = vmatprep.subr.bf16.mxu1 %v950_v0  ;;  %748 = vmatprep.mubr.msk.bf16.mxu1 %vm951_vm0, %v950_v0  ;;  %v793_v6 = vld [vmem:[#allocation5 + $0x8] sm:$0xff]   ;;  %v787_v7 = vld [vmem:[#allocation3 + $0x20] sm:$0xff]   ;;  %v794_v8 = vld [vmem:[#allocation5 + $0x10] sm:$0xff]  }
  0x4c   :  { %713 = vmatpush3.bf16.msra.mxu0 %v783_v1  ;;  %733 = vmatpush3.bf16.msra.mxu1 %v792_v4  ;;  %v788_v9 = vld [vmem:[#allocation3 + $0x28] sm:$0xff]   ;;  %v795_v10 = vld [vmem:[#allocation5 + $0x18] sm:$0xff]   ;;  %v789_v11 = vld [vmem:[#allocation3 + $0x30] sm:$0xff]  }
  0x4d   :  { %714 = vmatprep.subr.bf16.mxu0 %v950_v0  ;;  %734 = vmatprep.subr.bf16.mxu1 %v950_v0  ;;  %v796_v12 = vld [vmem:[#allocation5 + $0x20] sm:$0xff]   ;;  %v790_v13 = vld [vmem:[#allocation3 + $0x38] sm:$0xff]   ;;  %v797_v14 = vld [vmem:[#allocation5 + $0x28] sm:$0xff]  }
  0x4e   :  { %v791_v15 = vld [vmem:[%s1131_s0] sm:$0xff]   ;;  %v798_v16 = vld [vmem:[#allocation5 + $0x30] sm:$0xff]   ;;  %v799_v17 = vld [vmem:[#allocation5 + $0x38] sm:$0xff]  }
  0x4f   :  { %v800_v18 = vld [vmem:[#allocation7] sm:$0xff]   ;;  %v801_v19 = vld [vmem:[#allocation7 + $0x8] sm:$0xff]   ;;  %v802_v20 = vld [vmem:[#allocation7 + $0x10] sm:$0xff]  }
  0x50   :  { %715 = vmatpush3.bf16.msra.mxu0 %v784_v2  ;;  %735 = vmatpush3.bf16.msra.mxu1 %v793_v6  ;;  %v803_v21 = vld [vmem:[#allocation7 + $0x18] sm:$0xff]   ;;  %v804_v22 = vld [vmem:[#allocation7 + $0x20] sm:$0xff]   ;;  %v805_v23 = vld [vmem:[#allocation7 + $0x28] sm:$0xff]   ;;  %v952_v2 = vmov 0  }
  0x51   :  { %716 = vmatprep.subr.bf16.mxu0 %v950_v0  ;;  %736 = vmatprep.subr.bf16.mxu1 %v950_v0  ;;  %v641_v24 = vld [vmem:[%s1133_s2] ss:$0 sm:$0xff]  ;;  %v806_v36 = vld [vmem:[#allocation7 + $0x30] sm:$0xff]   ;;  %v807_v37 = vld [vmem:[#allocation7 + $0x38] sm:$0xff]  }
  0x52   :  { %v808_v38 = vld [vmem:[#allocation8] ss:$8 sps:$4 sm:$0xff]   ;;  %v810_v39 = vld [vmem:[#allocation8 + $0x4] ss:$8 sps:$4 sm:$0xff]   ;;  %v813_v40 = vld [vmem:[#allocation8 + $0x14] ss:$8 sps:$4 sm:$0xff]  }
  0x53   :  { %v811_v41 = vld [vmem:[#allocation8 + $0x10] ss:$8 sps:$4 sm:$0xff]   ;;  %v816_v42 = vld [vmem:[#allocation8 + $0x24] ss:$8 sps:$4 sm:$0xff]   ;;  %v814_v43 = vld [vmem:[#allocation8 + $0x20] ss:$8 sps:$4 sm:$0xff]  }
  0x54   :  { %717 = vmatpush3.bf16.msra.mxu0 %v785_v3  ;;  %737 = vmatpush3.bf16.msra.mxu1 %v794_v8  ;;  %v819_v44 = vld [vmem:[#allocation8 + $0x34] ss:$8 sps:$4 sm:$0xff]   ;;  %v817_v45 = vld [vmem:[#allocation8 + $0x30] ss:$8 sps:$4 sm:$0xff]   ;;  %v822_v46 = vld [vmem:[#allocation8 + $0x44] ss:$8 sps:$4 sm:$0xff]  }
  0x55   :  { %718 = vmatprep.subr.bf16.mxu0 %v950_v0  ;;  %738 = vmatprep.subr.bf16.mxu1 %v950_v0  ;;  %v820_v47 = vld [vmem:[#allocation8 + $0x40] ss:$8 sps:$4 sm:$0xff]   ;;  %v825_v48 = vld [vmem:[#allocation8 + $0x54] ss:$8 sps:$4 sm:$0xff]   ;;  %v823_v49 = vld [vmem:[#allocation8 + $0x50] ss:$8 sps:$4 sm:$0xff]  }
  0x56   :  { %v651_v50 = vld [vmem:[%s1135_s4] ss:$0 sm:$0xff]  ;;  %v828_v62 = vld [vmem:[#allocation8 + $0x64] ss:$8 sps:$4 sm:$0xff]   ;;  %v829_v1 = vld [vmem:[#allocation8 + $0x70] ss:$8 sps:$4 sm:$0xff]  }
  0x57   :  { %v826_v63 = vld [vmem:[#allocation8 + $0x60] ss:$8 sps:$4 sm:$0xff]  }
  0x58   :  { %719 = vmatpush3.bf16.msra.mxu0 %v786_v5  ;;  %739 = vmatpush3.bf16.msra.mxu1 %v795_v10  ;;  %v660_v3 = vld [vmem:[%s1137_s6] ss:$0 sm:$0xff] }
  0x59   :  { %720 = vmatprep.subr.bf16.mxu0 %v950_v0  ;;  %740 = vmatprep.subr.bf16.mxu1 %v950_v0 }
  0x5c   :  { %721 = vmatpush3.bf16.msra.mxu0 %v787_v7  ;;  %741 = vmatpush3.bf16.msra.mxu1 %v796_v12 }
  0x5d   :  { %722 = vmatprep.subr.bf16.mxu0 %v950_v0  ;;  %742 = vmatprep.subr.bf16.mxu1 %v950_v0 }
  0x60   :  { %723 = vmatpush3.bf16.msra.mxu0 %v788_v9  ;;  %743 = vmatpush3.bf16.msra.mxu1 %v797_v14 }
  0x61   :  { %724 = vmatprep.subr.bf16.mxu0 %v950_v0  ;;  %744 = vmatprep.subr.bf16.mxu1 %v950_v0 }
  0x64   :  { %725 = vmatpush3.bf16.msra.mxu0 %v789_v11  ;;  %745 = vmatpush3.bf16.msra.mxu1 %v798_v16 }
  0x65   :  { %726 = vmatprep.subr.bf16.mxu0 %v950_v0  ;;  %746 = vmatprep.subr.bf16.mxu1 %v950_v0 }
  0x68   :  { %727 = vmatpush3.bf16.msra.mxu0 %v790_v13  ;;  %747 = vmatpush3.bf16.msra.mxu1 %v799_v17 }
  0x69   :  { %752 = vmatprep.subr.bf16.mxu0 %v950_v0  ;;  %567 = vmatprep.subr.bf16.mxu1 %v810_v39 }
  0x6b   :  { %729 = vmatmul.mubr.bf16.vlgmr.msra.gmra.mrb[0].mxu0 %v791_v15  ;;  %v477_v15 = vlaneseq }
  0x6c   :  { %768 = vmatprep.mubr.msk.bf16.mxu0 %vm951_vm0, %v950_v0  ;;  %753 = vmatpush3.bf16.msra.mxu0 %v800_v18  ;;  %v475_v18 = vld [vmem:[%s1139_s8] sm:$0x3] }
  0x6d   :  { %754 = vmatprep.subr.bf16.mxu0 %v950_v0  ;;  %v478_v16 = vshrl.u32 %v477_v15, 7 }
  0x6f   :  { %v479_v17 = vsub.s32 0, %v478_v16 }
  0x70   :  { %755 = vmatpush3.bf16.msra.mxu0 %v801_v19  ;;  %v483_v19 = vsub.s32 1, %v478_v16 }
  0x71   :  { %756 = vmatprep.subr.bf16.mxu0 %v950_v0 }
  0x74   :  { %757 = vmatpush3.bf16.msra.mxu0 %v802_v20  ;;  %v480_v20 = vrot.slane %v475_v18, %v479_v17 }
  0x75   :  { %758 = vmatprep.subr.bf16.mxu0 %v950_v0 }
  0x78   :  { %759 = vmatpush3.bf16.msra.mxu0 %v803_v21  ;;  %v484_v21 = vrot.slane %v475_v18, %v483_v19 }
  0x79   :  { %760 = vmatprep.subr.bf16.mxu0 %v950_v0 }
  0x7c   :  { %761 = vmatpush3.bf16.msra.mxu0 %v804_v22 }
  0x7d   :  { %762 = vmatprep.subr.bf16.mxu0 %v950_v0 }
  0x80   :  { %763 = vmatpush3.bf16.msra.mxu0 %v805_v23 }
  0x81   :  { %764 = vmatprep.subr.bf16.mxu0 %v950_v0 }
  0x84   :  { %765 = vmatpush3.bf16.msra.mxu0 %v806_v36 }
  0x85   :  { %766 = vmatprep.subr.bf16.mxu0 %v950_v0  ;;  %v831_v0 = vld [vmem:[#allocation8 + $0x74] ss:$8 sps:$4 sm:$0xff]  }
  0x88   :  { %767 = vmatpush3.bf16.msra.mxu0 %v807_v37 }
 0x13e   :  { %v205_v25 = vpop.f32.mrb[0].mxu0 }
 0x13f   :  { %v206_v26 = vadd.f32 %v641_v24, %v205_v25  ;;  %v730_v27 = vpop.f32.mrb[1].mxu0 }
 0x140   :  { %v208_v28 = vpop.f32.mrb[2].mxu0 }
 0x141   :  { %v214_v29 = vmul.f32 0.01, %v206_v26  ;;  %v209_v30 = vadd.f32 %v641_v24, %v208_v28  ;;  %v731_v31 = vpop.f32.mrb[3].mxu0  ;;  %vm212_vm1 = vcmp.ge.f32.partialorder %v206_v26, 0.0 }
 0x143   :  { %vm213_vm2 = vcmp.ge.f32.partialorder %v209_v30, 0.0  ;;  %v215_v32 = vmul.f32 0.01, %v209_v30  ;;  %v216_v33 = vsel %vm212_vm1, %v206_v26, %v214_v29 }
 0x145   :  { %v217_v34 = vsel %vm213_vm2, %v209_v30, %v215_v32 }
 0x146   :  { %v218_v35 = vpack.c.bf16 %v217_v34, %v216_v33 }
 0x148   :  { %749 = vmatmul.mubr.bf16.vlgmr.msra.gmra.mrb[0].mxu1 %v218_v35 }
 0x149   :  { %568 = vmatpush1.bf16.msra.mxu1 %v808_v38  ;;  %599 = vmatprep.mubr.bf16.mxu1 %v952_v2 }
 0x14a   :  { %569 = vmatprep.subr.bf16.mxu1 %v813_v40 }
 0x14d   :  { %570 = vmatpush1.bf16.msra.mxu1 %v811_v41 }
 0x14e   :  { %571 = vmatprep.subr.bf16.mxu1 %v816_v42 }
 0x151   :  { %572 = vmatpush1.bf16.msra.mxu1 %v814_v43 }
 0x152   :  { %573 = vmatprep.subr.bf16.mxu1 %v819_v44 }
 0x155   :  { %574 = vmatpush1.bf16.msra.mxu1 %v817_v45 }
 0x156   :  { %575 = vmatprep.subr.bf16.mxu1 %v822_v46 }
 0x159   :  { %576 = vmatpush1.bf16.msra.mxu1 %v820_v47 }
 0x15a   :  { %577 = vmatprep.subr.bf16.mxu1 %v825_v48 }
 0x15d   :  { %578 = vmatpush1.bf16.msra.mxu1 %v823_v49 }
 0x15e   :  { %579 = vmatprep.subr.bf16.mxu1 %v828_v62 }
 0x161   :  { %580 = vmatpush1.bf16.msra.mxu1 %v826_v63 }
 0x162   :  { %581 = vmatprep.subr.bf16.mxu1 %v831_v0 }
 0x165   :  { %582 = vmatpush1.bf16.msra.mxu1 %v829_v1 }
 0x21b   :  { %v324_v51 = vpop.f32.mrb[0].mxu1 }
 0x21c   :  { %v325_v52 = vadd.f32 %v651_v50, %v324_v51  ;;  %v750_v53 = vpop.f32.mrb[1].mxu1 }
 0x21d   :  { %v327_v54 = vpop.f32.mrb[2].mxu1 }
 0x21e   :  { %v333_v55 = vmul.f32 0.01, %v325_v52  ;;  %v328_v56 = vadd.f32 %v651_v50, %v327_v54  ;;  %v751_v57 = vpop.f32.mrb[3].mxu1  ;;  %vm331_vm3 = vcmp.ge.f32.partialorder %v325_v52, 0.0 }
 0x220   :  { %vm332_vm4 = vcmp.ge.f32.partialorder %v328_v56, 0.0  ;;  %v334_v58 = vmul.f32 0.01, %v328_v56  ;;  %v335_v59 = vsel %vm331_vm3, %v325_v52, %v333_v55 }
 0x222   :  { %v336_v60 = vsel %vm332_vm4, %v328_v56, %v334_v58 }
 0x223   :  { %v337_v61 = vpack.c.bf16 %v336_v60, %v335_v59 }
 0x225   :  { %769 = vmatmul.mubr.bf16.vlgmr.msra.gmra.mrb[4].mxu0 %v337_v61 }
 0x2f8   :  { %v443_v4 = vpop.f32.mrb[4].mxu0 }
 0x2f9   :  { %v444_v5 = vadd.f32 %v660_v3, %v443_v4  ;;  %v770_v6 = vpop.f32.mrb[5].mxu0 }
 0x2fa   :  { %v446_v7 = vpop.f32.mrb[6].mxu0 }
 0x2fb   :  { %v452_v8 = vmul.f32 0.01, %v444_v5  ;;  %v447_v9 = vadd.f32 %v660_v3, %v446_v7  ;;  %v771_v10 = vpop.f32.mrb[7].mxu0  ;;  %vm450_vm5 = vcmp.ge.f32.partialorder %v444_v5, 0.0 }
 0x2fd   :  { %vm451_vm6 = vcmp.ge.f32.partialorder %v447_v9, 0.0  ;;  %v453_v11 = vmul.f32 0.01, %v447_v9  ;;  %v454_v12 = vsel %vm450_vm5, %v444_v5, %v452_v8 }
 0x2ff   :  { %v455_v13 = vsel %vm451_vm6, %v447_v9, %v453_v11 }
 0x300   :  { %v456_v14 = vpack.c.bf16 %v455_v13, %v454_v12 }
 0x302   :  { %600 = vmatmul.mubr.bf16.vlgmr.msra.gmra.mrb[4].mxu1 %v456_v14 }
 0x3d5   :  { %v601_v22 = vpop.f32.mrb[4].mxu1 }
 0x3d6   :  { %v602_v23 = vadd.f32 %v601_v22, %v480_v20  ;;  %v603_v24 = vpop.f32.mrb[5].mxu1 }
 0x3d7   :  { %v604_v25 = vadd.f32 %v603_v24, %v484_v21  ;;  %v605_v26 = vpop.f32.mrb[6].mxu1 }
 0x3d8   :  { %v610_v27 = vsub.f32 0.0, %v602_v23  ;;  %v606_v28 = vadd.f32 %v605_v26, %v480_v20  ;;  %v607_v29 = vpop.f32.mrb[7].mxu1 }
 0x3d9   :  { %v611_v30 = vsub.f32 0.0, %v604_v25  ;;  %v608_v31 = vadd.f32 %v607_v29, %v484_v21 }
 0x3da   :  { %v614_v32 = vmul.f32 1.442695, %v610_v27  ;;  %v612_v33 = vsub.f32 0.0, %v606_v28 }
 0x3db   :  { %v616_v34 = vmul.f32 1.442695, %v611_v30  ;;  %v613_v35 = vsub.f32 0.0, %v608_v31 }
 0x3dc   :  { %832 = vpow2.f32 %v614_v32  ;;  %v618_v36 = vmul.f32 1.442695, %v612_v33 }
 0x3dd   :  { %834 = vpow2.f32 %v616_v34  ;;  %v620_v37 = vmul.f32 1.442695, %v613_v35 }
 0x3de   :  { %836 = vpow2.f32 %v618_v36 }
 0x3df   :  { %838 = vpow2.f32 %v620_v37 }
 0x3e6   :  { %v833_v38 = vpop.eup %832 }
 0x3e7   :  { %v835_v39 = vpop.eup %834  ;;  %v622_v40 = vadd.f32 1.0, %v833_v38 }
 0x3e8   :  { %v837_v41 = vpop.eup %836  ;;  %v623_v42 = vadd.f32 1.0, %v835_v39 }
 0x3e9   :  { %v839_v43 = vpop.eup %838  ;;  %840 = vrcp.f32 %v622_v40  ;;  %v624_v44 = vadd.f32 1.0, %v837_v41 }
 0x3ea   :  { %842 = vrcp.f32 %v623_v42  ;;  %v625_v45 = vadd.f32 1.0, %v839_v43 }
 0x3eb   :  { %844 = vrcp.f32 %v624_v44 }
 0x3ec   :  { %846 = vrcp.f32 %v625_v45 }
 0x3f3   :  { %v841_v46 = vpop.eup %840 }
 0x3f4   :  { %v843_v47 = vpop.eup %842  ;;  %630 = vst [vmem:[%s1140_s9] sm:$0xff] %v841_v46 }
 0x3f5   :  { %v845_v48 = vpop.eup %844  ;;  %631 = vst [vmem:[%s1140_s9 + $0x8] sm:$0xff] %v843_v47 }
 0x3f6   :  { %v847_v49 = vpop.eup %846  ;;  %632 = vst [vmem:[%s1140_s9 + $0x10] sm:$0xff] %v845_v48 }
 0x3f7   :  { %633 = vst [vmem:[%s1140_s9 + $0x18] sm:$0xff] %v847_v49 }
 0x3f8   :  { %638 = vsyncpa [#allocation4], 1 }
 0x3f9   :  { %639 = vsyncpa [#allocation6], 1 }
 0x3fa   :  { %640 = vsyncpa [#allocation9], 1 }

</bundles_post_ra>
